<compile_context>
chip_gen: v6e
topology: v6e:2x2x1
jax: 0.10.0
libtpu: 0.0.40
codegen_flags: <defaults>
</compile_context>

<pallas_src>
import jax
import jax.numpy as jnp
from jax.experimental import pallas as pl
from jax.experimental.pallas import tpu as pltpu


def _elementwise_kernel(x_ref, o_ref):
    x = x_ref[...]
    half = jnp.asarray(0.5, dtype=x.dtype)
    off = jnp.asarray(10.5, dtype=x.dtype)
    # ((x*2 + 3 - 1) / 4) + (0+1+2+3+4)  ==  x*0.5 + 10.5
    o_ref[...] = x * half + off


def _run_slab(slab):
    """Run the elementwise kernel on a lane-dense (rows, lanes) slab."""
    rows, lanes = slab.shape
    itemsize = jnp.dtype(slab.dtype).itemsize

    # dtype-aware sublane multiple: f32 -> 8, bf16/f16 -> 16, int8/fp8 -> 32
    sub = {4: 8, 2: 16, 1: 32}.get(itemsize, 8)

    # ~4 MiB per block: amortizes per-grid-step overhead, near HBM roofline
    # on v5e/v6e, and (in+out) x double-buffer = 16 MiB stays safe on v7x.
    target_bytes = 4 * 1024 * 1024
    tile_rows = max(sub, target_bytes // (lanes * itemsize))
    tile_rows = (tile_rows // sub) * sub

    # Keep >= 2 blocks for larger arrays so v7x can shard the grid across
    # both TensorCores (harmless on v5e/v6e).
    if rows > 2 * sub:
        half_rows = ((rows + 1) // 2 + sub - 1) // sub * sub
        tile_rows = min(tile_rows, half_rows)

    if tile_rows >= rows:
        tile_rows = rows  # single block == full array dims (always legal)

    grid = (pl.cdiv(rows, tile_rows),)

    return pl.pallas_call(
        _elementwise_kernel,
        out_shape=jax.ShapeDtypeStruct(slab.shape, slab.dtype),
        grid=grid,
        in_specs=[pl.BlockSpec((tile_rows, lanes), lambda i: (i, 0))],
        out_specs=pl.BlockSpec((tile_rows, lanes), lambda i: (i, 0)),
        compiler_params=pltpu.CompilerParams(
            dimension_semantics=("parallel",),
            # Explicit: above v5e's 16 MiB scoped default, equal to the
            # v6e/v7x defaults, well inside every generation's physical VMEM.
            vmem_limit_bytes=32 * 1024 * 1024,
        ),
        cost_estimate=pl.CostEstimate(
            flops=2 * slab.size,
            transcendentals=0,
            bytes_accessed=2 * slab.size * itemsize,
        ),
    )(slab)


def pt_module_forward(x):
    """x: float array, arbitrary shape (NCHW in the example)."""
    orig_shape = x.shape
    n = x.size

    half = jnp.asarray(0.5, dtype=x.dtype)
    off = jnp.asarray(10.5, dtype=x.dtype)

    # Prefer wide lane counts that divide n exactly (no pad / slice passes).
    lanes = None
    for cand in (8192, 4096, 2048, 1024, 512, 256, 128):
        if n % cand == 0:
            lanes = cand
            break

    if lanes is not None:
        slab = jnp.reshape(x, (n // lanes, lanes))
        return jnp.reshape(_run_slab(slab), orig_shape)

    # Fallback (n not a multiple of 128): run the kernel on the 128-aligned
    # prefix; handle the <128-element tail with plain jnp.  Avoids the extra
    # full-array HBM passes that jnp.pad + post-slice would cost.
    lanes = 128
    n_main = (n // lanes) * lanes
    flat = jnp.reshape(x, (-1,))
    if n_main == 0:
        # Tiny input: not worth a kernel launch.
        return jnp.reshape(flat * half + off, orig_shape)
    main = jnp.reshape(flat[:n_main], (n_main // lanes, lanes))
    main_out = jnp.reshape(_run_slab(main), (-1,))
    tail_out = flat[n_main:] * half + off
    return jnp.reshape(jnp.concatenate([main_out, tail_out]), orig_shape)


if __name__ == "__main__":
    key = jax.random.PRNGKey(0)
    x = jax.random.normal(key, (2, 4, 16, 16), dtype=jnp.float32)

    # Reference: literal op-by-op chain from the PyTorch forward.
    ref = ((((x * 2) + 3) - 1) / 4) + 0 + 1 + 2 + 3 + 4

    fwd = jax.jit(pt_module_forward)
    out = fwd(x)
    out = jax.block_until_ready(out)

    assert out.shape == x.shape and out.dtype == x.dtype
    assert jnp.allclose(out, ref, atol=1e-6, rtol=1e-6)

    print("KERNEL_OK")
</pallas_src>

<mosaic_0001>
module attributes {stable_mosaic.version = 11 : i64} {
  func.func @_elementwise_kernel(%arg0: i32, %arg1: memref<1x2048xf32, #tpu.memory_space<vmem>>, %arg2: memref<1x2048xf32, #tpu.memory_space<vmem>>) attributes {dimension_semantics = [#tpu.dimension_semantics<parallel>], iteration_bounds = array<i64: 1>, scalar_prefetch = 0 : i64, scratch_operands = 0 : i64, tpu.core_type = #tpu.core_type<tc>, window_params = [{transform_indices = @transform_0, window_bounds = array<i64: 1, 2048>}, {transform_indices = @transform_1, window_bounds = array<i64: 1, 2048>}]} {
    %c0 = arith.constant 0 : index
    %c0_0 = arith.constant 0 : index
    %0 = vector.load %arg1[%c0, %c0_0] : memref<1x2048xf32, #tpu.memory_space<vmem>>, vector<1x2048xf32>
    %cst = arith.constant 5.000000e-01 : f32
    %1 = vector.broadcast %cst : f32 to vector<1x2048xf32>
    %2 = arith.mulf %0, %1 : vector<1x2048xf32>
    %cst_1 = arith.constant 1.050000e+01 : f32
    %3 = vector.broadcast %cst_1 : f32 to vector<1x2048xf32>
    %4 = arith.addf %2, %3 : vector<1x2048xf32>
    %c0_2 = arith.constant 0 : index
    %c0_3 = arith.constant 0 : index
    %5 = vector.load %arg2[%c0_2, %c0_3] : memref<1x2048xf32, #tpu.memory_space<vmem>>, vector<1x2048xf32>
    tpu.vector_store %arg2[%c0_2, %c0_3], %4 {strides = array<i32>} : memref<1x2048xf32, #tpu.memory_space<vmem>>, vector<1x2048xf32>,
    return
  }
  func.func @transform_0(%arg0: i32) -> (i32, i32) {
    %c0_i32 = arith.constant 0 : i32
    %c0_i32_0 = arith.constant 0 : i32
    return %arg0, %c0_i32 : i32, i32
  }
  func.func @transform_1(%arg0: i32) -> (i32, i32) {
    %c0_i32 = arith.constant 0 : i32
    %c0_i32_0 = arith.constant 0 : i32
    return %arg0, %c0_i32 : i32, i32
  }
}

</mosaic_0001>

<bundles_post_ra>
// kernel: pt_module_forward.1
= control target key start
LH: loop header
LB: loop body
LE: loop exit
PB: predicated region body
PF: predicated region fallthrough
CT: control target
= control target key end

     0   :  { %s42_s0 = inlined_call_operand.vmem [shape: f32[1,2048], index: 0, kind: input, shape index: {}]   ;;  %s43_s1 = inlined_call_operand.vmem [shape: f32[1,2048], index: 1, kind: output, shape index: {}]  }
   0x1   :  { %v8_v0 = vld [vmem:[%s42_s0] sm:$0xff]  ;;  %v9_v1 = vld [vmem:[%s42_s0 + $0x8] sm:$0xff] }
   0x2   :  { %v10_v2 = vmul.f32 0.5, %v8_v0  ;;  %v11_v3 = vmul.f32 0.5, %v9_v1 }
   0x4   :  { %v12_v4 = vadd.f32 10.5, %v10_v2  ;;  %v13_v5 = vadd.f32 10.5, %v11_v3 }
   0x6   :  { %14 = vst [vmem:[%s43_s1] sm:$0xff] %v12_v4  ;;  %15 = vst [vmem:[%s43_s1 + $0x8] sm:$0xff] %v13_v5 }

</bundles_post_ra>
